<compile_context>
chip_gen: v6e
topology: v6e:2x2x1
jax: 0.10.0
libtpu: 0.0.40
codegen_flags: <defaults>
</compile_context>

<pallas_src>
import functools

import jax
import jax.numpy as jnp
from jax import lax
from jax.experimental import pallas as pl
from jax.experimental.pallas import tpu as pltpu

_LANE = 128            # TPU lane width
_CHANNEL_CHUNK = 128   # channels kept live in vregs while accumulating (<= ~32 vregs)
_MAX_GROUPS = 256      # cap on unrolled 128-lane groups per spatial tile (code size)


def channel_attention_kernel(x_ref, w1_ref, b1_ref, w2_ref, b2_ref, o_ref,
                             sum_acc, max_acc, *,
                             hw_total, num_spatial_tiles, n_groups,
                             mask_last, last_full_groups, last_boundary):
    """One (batch, spatial-tile) grid step.

    x_ref  : (1, C, T_hw) spatial tile; channels on sublanes, spatial on lanes.
    w1_ref : (C, mid)   b1_ref : (1, mid)   (row-vector x @ W + b convention)
    w2_ref : (mid, C)   b2_ref : (1, C)
    o_ref  : (1, 1, C)  lane-dense sigmoid channel attention (written at last tile)
    sum_acc, max_acc : (C, 128) f32 VMEM running partials.
    """
    k = pl.program_id(1)
    n_k = pl.num_programs(1)
    C = sum_acc.shape[0]

    @pl.when(k == 0)
    def _init():
        sum_acc[...] = jnp.zeros_like(sum_acc)
        max_acc[...] = jnp.full_like(max_acc, -jnp.inf)

    def accumulate(full_groups, boundary_rem):
        # Hot loop: 1 vreg load + 1 add + 1 max per (<=128ch x 128lane) block.
        for c0 in range(0, C, _CHANNEL_CHUNK):
            cc = min(_CHANNEL_CHUNK, C - c0)
            s = sum_acc[c0:c0 + cc, :]
            m = max_acc[c0:c0 + cc, :]
            for g in range(full_groups):
                blk = x_ref[0, c0:c0 + cc,
                            g * _LANE:(g + 1) * _LANE].astype(jnp.float32)
                s = s + blk
                m = jnp.maximum(m, blk)
            if boundary_rem:  # only the single partial 128-lane group is masked
                g = full_groups
                blk = x_ref[0, c0:c0 + cc,
                            g * _LANE:(g + 1) * _LANE].astype(jnp.float32)
                lane = lax.broadcasted_iota(jnp.int32, blk.shape, 1)
                valid = lane < boundary_rem
                s = s + jnp.where(valid, blk, 0.0)
                m = jnp.maximum(m, jnp.where(valid, blk, -jnp.inf))
            sum_acc[c0:c0 + cc, :] = s
            max_acc[c0:c0 + cc, :] = m

    if mask_last:
        if num_spatial_tiles > 1:
            @pl.when(k < n_k - 1)
            def _interior():
                accumulate(n_groups, 0)

        @pl.when(k == n_k - 1)
        def _last_tile():
            accumulate(last_full_groups, last_boundary)
    else:
        accumulate(n_groups, 0)

    @pl.when(k == n_k - 1)
    def _finalize():
        # Single cross-lane reduce of the wide accumulators (XLU, once per batch).
        avg = jnp.sum(sum_acc[...], axis=-1, keepdims=True) * (1.0 / float(hw_total))
        mx = jnp.max(max_acc[...], axis=-1, keepdims=True)              # (C, 1)
        col = lax.broadcasted_iota(jnp.int32, (C, 2), 1)
        pooled = jnp.where(col == 0, avg, mx)                           # (C, 2)
        # Shared MLP on both pooled vectors at once; contract over the channel
        # (sublane) axis of `pooled` directly -> no explicit transpose needed.
        h = lax.dot_general(pooled, w1_ref[...],
                            (((0,), (0,)), ((), ())),
                            preferred_element_type=jnp.float32)          # (2, mid)
        h = jnp.maximum(h + b1_ref[...], 0.0)                            # ReLU
        out2 = jnp.dot(h, w2_ref[...],
                       preferred_element_type=jnp.float32) + b2_ref[...]  # (2, C)
        att = jax.nn.sigmoid(out2[0:1, :] + out2[1:2, :])                # (1, C)
        o_ref[0] = att.astype(o_ref.dtype)


def _vmem_limit_bytes():
    """Generation-aware scoped-VMEM limit."""
    phys = None
    try:
        phys = int(pltpu.get_tpu_info().vmem_capacity_bytes)
    except Exception:
        phys = None
    if phys is None or phys <= 64 * 1024 * 1024:
        return 48 * 1024 * 1024        # v7x-class (64 MiB physical): leave headroom
    return 64 * 1024 * 1024            # v5e / v6e (128 MiB physical)


def _choose_hw_tile(hw, c, vmem_limit, itemsize=4,
                    target_bytes=8 * 1024 * 1024):
    """Spatial tile: multiple of 128 lanes, ~8 MiB target (amortizes the
    ~0.35 us/step grid overhead, lengthens per-channel DMA rows), capped so the
    double-buffered input stays well inside the per-generation VMEM limit and
    the unrolled per-tile group loop stays a reasonable size."""
    hw_pad = pl.cdiv(hw, _LANE) * _LANE
    target_bytes = min(target_bytes, vmem_limit // 3)   # 2x double-buffer + slack
    t = (target_bytes // (c * itemsize)) // _LANE * _LANE
    t = max(t, _LANE)
    t = min(t, _MAX_GROUPS * _LANE)
    return min(t, hw_pad)


def channel_attention(x_nchw, w1, b1, w2, b2):
    """x_nchw: (B, C, H, W) f32.  w1:(C,mid), b1:(mid,), w2:(mid,C), b2:(C,)
    in x @ W + b convention (PyTorch Linear weights transposed).
    Returns (B, C, 1, 1) sigmoid channel-attention weights."""
    B, C, H, W = x_nchw.shape
    HW = H * W
    mid = w1.shape[1]

    # Free reshape only -- no HBM transpose / copy of the feature map.
    x = x_nchw.reshape(B, C, HW)
    b1r = b1.reshape(1, mid)
    b2r = b2.reshape(1, C)

    vmem_limit = _vmem_limit_bytes()
    t_hw = _choose_hw_tile(HW, C, vmem_limit)
    n_k = pl.cdiv(HW, t_hw)
    rem = HW - (n_k - 1) * t_hw              # valid lanes in the last tile
    mask_last = rem != t_hw

    kernel = functools.partial(
        channel_attention_kernel,
        hw_total=HW,
        num_spatial_tiles=n_k,
        n_groups=t_hw // _LANE,
        mask_last=mask_last,
        last_full_groups=rem // _LANE,
        last_boundary=rem % _LANE,
    )

    att = pl.pallas_call(
        kernel,
        out_shape=jax.ShapeDtypeStruct((B, 1, C), jnp.float32),
        grid_spec=pltpu.PrefetchScalarGridSpec(
            num_scalar_prefetch=0,
            grid=(B, n_k),                               # reduction axis last
            in_specs=[
                pl.BlockSpec((1, C, t_hw), lambda b, k: (b, 0, k)),
                pl.BlockSpec((C, mid), lambda b, k: (0, 0)),
                pl.BlockSpec((1, mid), lambda b, k: (0, 0)),
                pl.BlockSpec((mid, C), lambda b, k: (0, 0)),
                pl.BlockSpec((1, C), lambda b, k: (0, 0)),
            ],
            out_specs=pl.BlockSpec((1, 1, C), lambda b, k: (b, 0, 0)),
            scratch_shapes=[
                pltpu.VMEM((C, _LANE), jnp.float32),     # running sum (wide)
                pltpu.VMEM((C, _LANE), jnp.float32),     # running max (wide)
            ],
        ),
        compiler_params=pltpu.CompilerParams(
            dimension_semantics=("parallel", "arbitrary"),
            vmem_limit_bytes=vmem_limit,
        ),
    )(x, w1, b1r, w2, b2r)

    return att.reshape(B, C)[:, :, None, None]


def reference(x_nchw, w1, b1, w2, b2):
    """Pure-JAX reference matching the PyTorch forward."""
    avg = jnp.mean(x_nchw, axis=(2, 3))                  # (B, C)
    mx = jnp.max(x_nchw, axis=(2, 3))                    # (B, C)

    def mlp(v):
        return jnp.maximum(v @ w1 + b1, 0.0) @ w2 + b2

    return jax.nn.sigmoid(mlp(avg) + mlp(mx))[:, :, None, None]


def _run_case(key, B, C, H, W, reduction):
    mid = max(C // reduction, 1)
    k_x, k_w1, k_b1, k_w2, k_b2 = jax.random.split(key, 5)
    x = jax.random.normal(k_x, (B, C, H, W), dtype=jnp.float32)
    w1 = jax.random.normal(k_w1, (C, mid), dtype=jnp.float32) * 0.1
    b1 = jax.random.normal(k_b1, (mid,), dtype=jnp.float32) * 0.1
    w2 = jax.random.normal(k_w2, (mid, C), dtype=jnp.float32) * 0.1
    b2 = jax.random.normal(k_b2, (C,), dtype=jnp.float32) * 0.1

    out = jax.block_until_ready(channel_attention(x, w1, b1, w2, b2))
    ref = jax.block_until_ready(reference(x, w1, b1, w2, b2))

    assert out.shape == (B, C, 1, 1), out.shape
    assert jnp.allclose(out, ref, atol=1e-5, rtol=1e-5), (
        float(jnp.max(jnp.abs(out - ref))))


if __name__ == "__main__":
    key = jax.random.PRNGKey(0)
    k1, k2 = jax.random.split(key)
    # Main case: channels >= reduction, spatial a multiple of 128 (no masking).
    _run_case(k1, B=2, C=64, H=16, W=16, reduction=16)
    # Remainder case: H*W = 100 exercises the masked partial-group path.
    _run_case(k2, B=2, C=64, H=10, W=10, reduction=16)
    print("KERNEL_OK")
</pallas_src>

<mosaic_0001>
module attributes {stable_mosaic.version = 11 : i64} {
  func.func @channel_attention_kernel(%arg0: i32, %arg1: i32, %arg2: memref<1x64x256xf32, #tpu.memory_space<vmem>>, %arg3: memref<64x4xf32, #tpu.memory_space<vmem>>, %arg4: memref<1x4xf32, #tpu.memory_space<vmem>>, %arg5: memref<4x64xf32, #tpu.memory_space<vmem>>, %arg6: memref<1x64xf32, #tpu.memory_space<vmem>>, %arg7: memref<1x1x64xf32, #tpu.memory_space<vmem>>, %arg8: memref<64x128xf32, #tpu.memory_space<vmem>>, %arg9: memref<64x128xf32, #tpu.memory_space<vmem>>) attributes {dimension_semantics = [#tpu.dimension_semantics<parallel>, #tpu.dimension_semantics<arbitrary>], iteration_bounds = array<i64: 2, 1>, scalar_prefetch = 0 : i64, scratch_operands = 2 : i64, tpu.core_type = #tpu.core_type<tc>, window_params = [{transform_indices = @transform_0, window_bounds = array<i64: 1, 64, 256>}, {pipeline_mode = #tpu.pipeline_mode<synchronous>, transform_indices = @transform_1, window_bounds = array<i64: 64, 4>}, {pipeline_mode = #tpu.pipeline_mode<synchronous>, transform_indices = @transform_2, window_bounds = array<i64: 1, 4>}, {pipeline_mode = #tpu.pipeline_mode<synchronous>, transform_indices = @transform_3, window_bounds = array<i64: 4, 64>}, {pipeline_mode = #tpu.pipeline_mode<synchronous>, transform_indices = @transform_4, window_bounds = array<i64: 1, 64>}, {transform_indices = @transform_5, window_bounds = array<i64: 1, 1, 64>}]} {
    %c0_i32 = arith.constant 0 : i32
    %0 = arith.cmpi eq, %arg1, %c0_i32 : i32
    %1 = arith.extui %0 : i1 to i32
    %c0_i32_0 = arith.constant 0 : i32
    %2 = arith.cmpi ne, %1, %c0_i32_0 : i32
    scf.if %2 {
      %cst = arith.constant 0.000000e+00 : f32
      %18 = vector.broadcast %cst : f32 to vector<64x128xf32>
      %c0_15 = arith.constant 0 : index
      %c0_16 = arith.constant 0 : index
      %19 = vector.load %arg8[%c0_15, %c0_16] : memref<64x128xf32, #tpu.memory_space<vmem>>, vector<64x128xf32>
      tpu.vector_store %arg8[%c0_15, %c0_16], %18 {strides = array<i32>} : memref<64x128xf32, #tpu.memory_space<vmem>>, vector<64x128xf32>,
      %cst_17 = arith.constant 0xFF800000 : f32
      %20 = vector.broadcast %cst_17 : f32 to vector<64x128xf32>
      %c0_18 = arith.constant 0 : index
      %c0_19 = arith.constant 0 : index
      %21 = vector.load %arg9[%c0_18, %c0_19] : memref<64x128xf32, #tpu.memory_space<vmem>>, vector<64x128xf32>
      tpu.vector_store %arg9[%c0_18, %c0_19], %20 {strides = array<i32>} : memref<64x128xf32, #tpu.memory_space<vmem>>, vector<64x128xf32>,
    } else {
    }
    %c0 = arith.constant 0 : index
    %c0_1 = arith.constant 0 : index
    %3 = vector.load %arg8[%c0, %c0_1] : memref<64x128xf32, #tpu.memory_space<vmem>>, vector<64x128xf32>
    %c0_2 = arith.constant 0 : index
    %c0_3 = arith.constant 0 : index
    %4 = vector.load %arg9[%c0_2, %c0_3] : memref<64x128xf32, #tpu.memory_space<vmem>>, vector<64x128xf32>
    %c0_4 = arith.constant 0 : index
    %c0_5 = arith.constant 0 : index
    %c0_6 = arith.constant 0 : index
    %5 = vector.load %arg2[%c0_4, %c0_5, %c0_6] : memref<1x64x256xf32, #tpu.memory_space<vmem>>, vector<1x64x128xf32>
    %6 = vector.shape_cast %5 : vector<1x64x128xf32> to vector<64x128xf32>
    %7 = arith.addf %3, %6 : vector<64x128xf32>
    %8 = arith.maximumf %4, %6 : vector<64x128xf32>
    %c0_7 = arith.constant 0 : index
    %c0_8 = arith.constant 0 : index
    %c128 = arith.constant 128 : index
    %9 = vector.load %arg2[%c0_7, %c0_8, %c128] : memref<1x64x256xf32, #tpu.memory_space<vmem>>, vector<1x64x128xf32>
    %10 = vector.shape_cast %9 : vector<1x64x128xf32> to vector<64x128xf32>
    %11 = arith.addf %7, %10 : vector<64x128xf32>
    %12 = arith.maximumf %8, %10 : vector<64x128xf32>
    %c0_9 = arith.constant 0 : index
    %c0_10 = arith.constant 0 : index
    %13 = vector.load %arg8[%c0_9, %c0_10] : memref<64x128xf32, #tpu.memory_space<vmem>>, vector<64x128xf32>
    tpu.vector_store %arg8[%c0_9, %c0_10], %11 {strides = array<i32>} : memref<64x128xf32, #tpu.memory_space<vmem>>, vector<64x128xf32>,
    %c0_11 = arith.constant 0 : index
    %c0_12 = arith.constant 0 : index
    %14 = vector.load %arg9[%c0_11, %c0_12] : memref<64x128xf32, #tpu.memory_space<vmem>>, vector<64x128xf32>
    tpu.vector_store %arg9[%c0_11, %c0_12], %12 {strides = array<i32>} : memref<64x128xf32, #tpu.memory_space<vmem>>, vector<64x128xf32>,
    %c0_i32_13 = arith.constant 0 : i32
    %15 = arith.cmpi eq, %arg1, %c0_i32_13 : i32
    %16 = arith.extui %15 : i1 to i32
    %c0_i32_14 = arith.constant 0 : i32
    %17 = arith.cmpi ne, %16, %c0_i32_14 : i32
    scf.if %17 {
      %c0_15 = arith.constant 0 : index
      %c0_16 = arith.constant 0 : index
      %18 = vector.load %arg8[%c0_15, %c0_16] : memref<64x128xf32, #tpu.memory_space<vmem>>, vector<64x128xf32>
      %cst = arith.constant dense<0.000000e+00> : vector<64xf32>
      %19 = vector.multi_reduction <add>, %18, %cst [1] : vector<64x128xf32> to vector<64xf32>
      %20 = vector.shape_cast %19 : vector<64xf32> to vector<64x1xf32>
      %cst_17 = arith.constant 3.906250e-03 : f32
      %21 = vector.broadcast %cst_17 : f32 to vector<64x1xf32>
      %22 = arith.mulf %20, %21 : vector<64x1xf32>
      %c0_18 = arith.constant 0 : index
      %c0_19 = arith.constant 0 : index
      %23 = vector.load %arg9[%c0_18, %c0_19] : memref<64x128xf32, #tpu.memory_space<vmem>>, vector<64x128xf32>
      %cst_20 = arith.constant dense<0xFF800000> : vector<64xf32>
      %24 = vector.multi_reduction <maximumf>, %23, %cst_20 [1] : vector<64x128xf32> to vector<64xf32>
      %25 = vector.shape_cast %24 : vector<64xf32> to vector<64x1xf32>
      %26 = tpu.iota {dimensions = array<i32: 1>} : vector<64x2xi32>
      %c0_i32_21 = arith.constant 0 : i32
      %27 = vector.broadcast %c0_i32_21 : i32 to vector<64x2xi32>
      %28 = arith.cmpi eq, %26, %27 : vector<64x2xi32>
      %29 = vector.shape_cast %22 : vector<64x1xf32> to vector<64x1xf32>
      %30 = vector.broadcast %29 : vector<64x1xf32> to vector<64x2xf32>
      %31 = vector.shape_cast %25 : vector<64x1xf32> to vector<64x1xf32>
      %32 = vector.broadcast %31 : vector<64x1xf32> to vector<64x2xf32>
      %33 = arith.select %28, %30, %32 : vector<64x2xi1>, vector<64x2xf32>
      %c0_22 = arith.constant 0 : index
      %c0_23 = arith.constant 0 : index
      %34 = vector.load %arg3[%c0_22, %c0_23] : memref<64x4xf32, #tpu.memory_space<vmem>>, vector<64x4xf32>
      %cst_24 = arith.constant dense<0.000000e+00> : vector<2x4xf32>
      %35 = tpu.matmul %33, %34, %cst_24 {dimension_numbers = #tpu.dot_dimension_numbers<[0], [0], [1], [1], [0, 1, 1, 1], [], []>} : vector<64x2xf32>, vector<64x4xf32>, vector<2x4xf32> -> vector<2x4xf32>
      %c0_25 = arith.constant 0 : index
      %c0_26 = arith.constant 0 : index
      %36 = vector.load %arg4[%c0_25, %c0_26] : memref<1x4xf32, #tpu.memory_space<vmem>>, vector<1x4xf32>
      %37 = vector.broadcast %36 : vector<1x4xf32> to vector<2x4xf32>
      %38 = arith.addf %35, %37 : vector<2x4xf32>
      %cst_27 = arith.constant 0.000000e+00 : f32
      %39 = vector.broadcast %cst_27 : f32 to vector<2x4xf32>
      %40 = arith.maximumf %38, %39 : vector<2x4xf32>
      %c0_28 = arith.constant 0 : index
      %c0_29 = arith.constant 0 : index
      %41 = vector.load %arg5[%c0_28, %c0_29] : memref<4x64xf32, #tpu.memory_space<vmem>>, vector<4x64xf32>
      %cst_30 = arith.constant dense<0.000000e+00> : vector<2x64xf32>
      %42 = tpu.matmul %40, %41, %cst_30 {dimension_numbers = #tpu.dot_dimension_numbers<[1], [0], [0], [1], [0, 0, 1, 1], [], []>} : vector<2x4xf32>, vector<4x64xf32>, vector<2x64xf32> -> vector<2x64xf32>
      %c0_31 = arith.constant 0 : index
      %c0_32 = arith.constant 0 : index
      %43 = vector.load %arg6[%c0_31, %c0_32] : memref<1x64xf32, #tpu.memory_space<vmem>>, vector<1x64xf32>
      %44 = vector.broadcast %43 : vector<1x64xf32> to vector<2x64xf32>
      %45 = arith.addf %42, %44 : vector<2x64xf32>
      %46 = vector.extract_strided_slice %45 {offsets = [0, 0], sizes = [1, 64], strides = [1, 1]} : vector<2x64xf32> to vector<1x64xf32>
      %47 = vector.extract_strided_slice %45 {offsets = [1, 0], sizes = [1, 64], strides = [1, 1]} : vector<2x64xf32> to vector<1x64xf32>
      %48 = arith.addf %46, %47 : vector<1x64xf32>
      %49 = arith.negf %48 : vector<1x64xf32>
      %50 = math.exp %49 : vector<1x64xf32>
      %cst_33 = arith.constant 1.000000e+00 : f32
      %51 = vector.broadcast %cst_33 : f32 to vector<1x64xf32>
      %52 = arith.addf %51, %50 : vector<1x64xf32>
      %53 = arith.divf %51, %52 : vector<1x64xf32>
      %c0_34 = arith.constant 0 : index
      %c0_35 = arith.constant 0 : index
      %c0_36 = arith.constant 0 : index
      %54 = vector.load %arg7[%c0_34, %c0_35, %c0_36] : memref<1x1x64xf32, #tpu.memory_space<vmem>>, vector<1x1x64xf32>
      %55 = vector.shape_cast %54 : vector<1x1x64xf32> to vector<1x64xf32>
      %56 = vector.shape_cast %53 : vector<1x64xf32> to vector<1x1x64xf32>
      tpu.vector_store %arg7[%c0_34, %c0_35, %c0_36], %56 {strides = array<i32>} : memref<1x1x64xf32, #tpu.memory_space<vmem>>, vector<1x1x64xf32>,
    } else {
    }
    return
  }
  func.func @transform_0(%arg0: i32, %arg1: i32) -> (i32, i32, i32) {
    %c0_i32 = arith.constant 0 : i32
    %c0_i32_0 = arith.constant 0 : i32
    return %arg0, %c0_i32, %arg1 : i32, i32, i32
  }
  func.func @transform_1(%arg0: i32, %arg1: i32) -> (i32, i32) {
    %c0_i32 = arith.constant 0 : i32
    %c0_i32_0 = arith.constant 0 : i32
    %c0_i32_1 = arith.constant 0 : i32
    return %c0_i32, %c0_i32_0 : i32, i32
  }
  func.func @transform_2(%arg0: i32, %arg1: i32) -> (i32, i32) {
    %c0_i32 = arith.constant 0 : i32
    %c0_i32_0 = arith.constant 0 : i32
    %c0_i32_1 = arith.constant 0 : i32
    return %c0_i32, %c0_i32_0 : i32, i32
  }
  func.func @transform_3(%arg0: i32, %arg1: i32) -> (i32, i32) {
    %c0_i32 = arith.constant 0 : i32
    %c0_i32_0 = arith.constant 0 : i32
    %c0_i32_1 = arith.constant 0 : i32
    return %c0_i32, %c0_i32_0 : i32, i32
  }
  func.func @transform_4(%arg0: i32, %arg1: i32) -> (i32, i32) {
    %c0_i32 = arith.constant 0 : i32
    %c0_i32_0 = arith.constant 0 : i32
    %c0_i32_1 = arith.constant 0 : i32
    return %c0_i32, %c0_i32_0 : i32, i32
  }
  func.func @transform_5(%arg0: i32, %arg1: i32) -> (i32, i32, i32) {
    %c0_i32 = arith.constant 0 : i32
    %c0_i32_0 = arith.constant 0 : i32
    %c0_i32_1 = arith.constant 0 : i32
    return %arg0, %c0_i32, %c0_i32_0 : i32, i32, i32
  }
}

</mosaic_0001>

<bundles_post_ra>
// kernel: tpu_custom_call.1
= control target key start
LH: loop header
LB: loop body
LE: loop exit
PB: predicated region body
PF: predicated region fallthrough
CT: control target
= control target key end

     0   :  { %10 = vsyncpa [#allocation5], 0  ;;  %s1207_s0 = inlined_call_operand.hbm [shape: f32[2,64,256], index: 0, kind: input, shape index: {}]   ;;  %s1208_s1 = inlined_call_operand.vmem [shape: f32[64,4], index: 1, kind: input, shape index: {}]   ;;  %s1209_s2 = inlined_call_operand.vmem [shape: f32[1,4], index: 2, kind: input, shape index: {}]   ;;  %s1210_s3 = inlined_call_operand.vmem [shape: f32[4,64], index: 3, kind: input, shape index: {}]   ;;  %s1211_s4 = inlined_call_operand.vmem [shape: f32[1,64], index: 4, kind: input, shape index: {}]   ;;  %s1212_s5 = inlined_call_operand.hbm [shape: f32[2,1,64], index: 5, kind: output, shape index: {}]  }
   0x1   :  { %12 = vsyncpa [#allocation5 + $0x1], 0 }
   0x2   :  { %13 = vsyncpa [#allocation6], 0 }
   0x3   :  { %15 = vsyncpa [#allocation6 + $0x1], 0  ;;  %s1009_s18 = smov 0   ;;  %s1011_s19 = smov 0  }
   0x4   :  { %s1013_s20 = smov 0   ;;  %s1015_s21 = smov 0  }
   0x5   :  { %s1017_s22 = smov 0   ;;  %s1019_s23 = smov 0  }
   0x6 LB: > { %s739_s24 = sadd.s32 4294967295, %s971_s23   ;;  %s740_s25 = sadd.s32 4294967294, %s971_s23   ;;  %s971_s23 = sphi %s1019_s23, %s21_s23   ;;  %s967_s22 = sphi %s1017_s22, %s1223_s22   ;;  %s963_s21 = sphi %s1015_s21, %s1222_s21   ;;  %s959_s20 = sphi %s1013_s20, %s1221_s20   ;;  %s955_s19 = sphi %s1011_s19, %s1220_s19   ;;  %s951_s18 = sphi %s1009_s18, %s1219_s18  }
   0x7   : > { %s33_s26 = sadd.s32 1, %s967_s22  ;;  %s42_s27 = sadd.s32 1, %s959_s20 }
   0x8   : > { %p35_p0 = scmp.ge.s32.totalorder %s33_s26, 2  ;;  %p49_p1 = scmp.ne.s32.totalorder %s959_s20, %s955_s19 }
   0x9   : > { %p50_p2 = scmp.eq.s32.totalorder %s971_s23, 0  ;;  %p55_p3 = scmp.ne.s32.totalorder %s955_s19, %s951_s18 }
   0xa   : > { %s1225_s26 = smov (%p35_p0, %s33_s26), 0  ;;  %p56_p5 = scmp.eq.s32.totalorder %s739_s24, 0 }
   0xb   : > { %p1050_p4 = por %p50_p2, %p49_p1  ;;  %s37_s29 = ssub.s32 %s967_s22, %s1225_s26 }
   0xc   : > { %p163_p6 = scmp.eq.s32.totalorder %s739_s24, 1  ;;  %p40_p7 = scmp.eq.s32.totalorder %s37_s29, 0 }
   0xd   : > { %p1056_p8 = por %p56_p5, %p55_p3  ;;  %p169_p10 = scmp.eq.s32.totalorder %s740_s25, 1 }
   0xe   : > { %p1060_p9 = por %p163_p6, %p49_p1  ;;  %p805_p13 = scmp.lt.s32.totalorder %s971_s23, 2 }
   0xf   : > { %s1065_s7 = scalar_select %p40_p7, %s959_s20, %s42_s27  }
  0x10   : > { %p1067_p11 = por %p169_p10, %p55_p3  ;;  %s201_s9 = sand.u32 1, %s959_s20  }
  0x11   : > { %s743_s10 = sshll.u32 %s201_s9, 7  ;;  %s757_s11 = sshll.u32 %s967_s22, 11 }
  0x12   : > { %s213_s14 = scalar_lea.hbm %s1207_s0, %s757_s11  ;;  %s205_s15 = scalar_lea.vmem [#allocation4], %s743_s10 }
  0x13   : > { %s214_s16 = sshll.u32 %s205_s15, 4  ;;  %p1080_p0 = pnand %p805_p13, %p1050_p4  ;;  %s215_s16 = int_to_ptr.vmem [resolvable:$true] %s214_s16 }
  0x14   : > { %p746_p1 = scmp.ge.s32.totalorder %s971_s23, 1  ;;  %s202_s24 = scalar_lea.sflag [#allocation5], %s201_s9 }
  0x15   : > { %p865_p2 = pneg %p1080_p0  ;;  %s876_s25 = scalar_lea.vmem %s215_s16, 2048 }
  0x16   : > { %p877_p3 = scmp.ne.s32.totalorder %s215_s16, %s876_s25  ;;  %s973_s27 = smov [#allocation4]  }
  0x17   : > { %s881_s29 = sshll.u32 %s973_s27, 4  ;;  %s882_s29 = int_to_ptr.vmem [resolvable:$false] %s881_s29 }
  0x18   : > { %p879_p5 = pnand %p877_p3, %p865_p2  ;;  %s883_s10 = scalar_lea.vmem %s882_s29, 4096 }
  0x19   : > { %p884_p7 = scmp.lt.s32.totalorder %s215_s16, %s882_s29  ;;  %p885_p10 = scmp.lt.s32.totalorder %s883_s10, %s876_s25 }
  0x1a   : > { %p880_p6 = pneg %p879_p5 }
  0x1b   : > { %p886_p12 = por %p885_p10, %p884_p7 }
  0x1d   : > { %p887_p4 = pnand %p886_p12, %p880_p6 }
  0x1f   : > { %890 = shalt.err (!%p887_p4)
}
  0x20   : > { %s974_s28 = smov 256   ;;  %s975_s9 = smov 16  }
  0x21   : > { %800 = dma.hbm_to_vmem [thread:$0]  (!%p1080_p0), %s213_s14, 2048, %s215_s16, %s202_s24, %s974_s28, %s974_s28, %s975_s9  }
  0x22   : > { %p222_p13 = scmp.lt.s32.totalorder %s971_s23, 3 }
  0x24   : > { %p223_p2 = pnand %p746_p1, %p222_p13 }
  0x25   : > { %s1093_s11 = sand.u32 (!%p223_p2), 1, %s955_s19  }
  0x26   : > { %226 = sbr.rel (%p223_p2) target bundleno = 756 (0x2f4), region = 40  ;;  %s747_s12 = sshll.u32 (!%p223_p2), %s1093_s11, 7 }
  0x27   : > { %s229_s13 = scalar_lea.sflag (!%p223_p2), [#allocation5], %s1093_s11  ;;  %s1097_s15 = scalar_lea.vmem (!%p223_p2), [#allocation4], %s747_s12 }
  0x2b   : > { %942 = dma.done.wait (%p1056_p8), %s229_s13, 2048  }
  0x2c   : > { %944 = vsyncadd (%p1056_p8), %s229_s13, 4294965248  ;;  %v295_v0 = vld [vmem:[%s1097_s15] sm:$0xff]  ;;  %v319_v1 = vld [vmem:[%s1097_s15 + $0x8] sm:$0xff]  ;;  %v976_v33 = vmov 0.0   ;;  %vm977_vm0 = vmmov 0   ;;  %v418_v41 = vlaneseq  ;;  %vm476_vm2 = vcmask 523264  }
  0x2d   : > { %v296_v2 = vld [vmem:[%s1097_s15 + $0x10] sm:$0xff]  ;;  %v327_v3 = vadd.f32 %v319_v1, %v295_v0  ;;  %v335_v4 = vmax.f32 %v295_v0, %v319_v1  ;;  %v320_v5 = vld [vmem:[%s1097_s15 + $0x18] sm:$0xff]  ;;  %v297_v6 = vld [vmem:[%s1097_s15 + $0x20] sm:$0xff]  ;;  %769 = vmatprep.subr.mxu0 %v976_v33  ;;  %785 = vmatprep.mubr.msk.f32.mxu0 %vm977_vm0, %v976_v33  ;;  %vm563_vm3 = vcmask 1043456   ;;  %vm559_vm4 = vcmask 31744   ;;  %s754_s10 = sshll.u32 %s963_s21, 4 }
  0x2e   : > { %v321_v7 = vld [vmem:[%s1097_s15 + $0x28] sm:$0xff]  ;;  %v328_v8 = vadd.f32 %v320_v5, %v296_v2  ;;  %v298_v10 = vld [vmem:[%s1097_s15 + $0x30] sm:$0xff]  ;;  %v322_v11 = vld [vmem:[%s1097_s15 + $0x38] sm:$0xff]  ;;  %v336_v12 = vmax.f32 %v296_v2, %v320_v5  ;;  %788 = vmatprep.subr.mxu1 %v976_v33  ;;  %790 = vmatprep.mubr.msk.f32.mxu1 %vm977_vm0, %v976_v33  ;;  %v419_v42 = vand.u32 127, %v418_v41  ;;  %s257_s28 = scalar_lea.vmem [#allocation7], %s1093_s11  ;;  %vm647_vm5 = vcmask 516096  }
  0x2f   : > { %370 = vadd.xlane.f32.xlu0 %v327_v3  ;;  %402 = vmax.xlane.f32.xlu1 %v335_v4  ;;  %v329_v9 = vadd.f32 %v321_v7, %v297_v6  ;;  %v330_v13 = vadd.f32 %v322_v11, %v298_v10  ;;  %v299_v14 = vld [vmem:[%s1097_s15 + $0x40] sm:$0xff]  ;;  %v323_v15 = vld [vmem:[%s1097_s15 + $0x48] sm:$0xff]  ;;  %v337_v16 = vmax.f32 %v297_v6, %v321_v7  ;;  %v300_v18 = vld [vmem:[%s1097_s15 + $0x50] sm:$0xff]  ;;  %s662_s9 = sshll.u32 %s257_s28, 4  ;;  %s650_s30 = scalar_lea.sflag [#allocation6], %s1093_s11  ;;  %s663_s9 = int_to_ptr.vmem [resolvable:$true] %s662_s9 }
  0x30   : > { %v331_v17 = vadd.f32 %v323_v15, %v299_v14  ;;  %v324_v19 = vld [vmem:[%s1097_s15 + $0x58] sm:$0xff]  ;;  %v338_v20 = vmax.f32 %v298_v10, %v322_v11  ;;  %v301_v22 = vld [vmem:[%s1097_s15 + $0x60] sm:$0xff]  ;;  %v325_v23 = vld [vmem:[%s1097_s15 + $0x68] sm:$0xff]  ;;  %v339_v24 = vmax.f32 %v299_v14, %v323_v15  ;;  %vm420_vm1 = vcmp.eq.s32.totalorder %v419_v42, 0  ;;  %s891_s14 = scalar_lea.vmem %s663_s9, 16  ;;  %s978_s16 = smov [#allocation7]  }
  0x31   : > { %v332_v21 = vadd.f32 %v324_v19, %v300_v18  ;;  %v333_v25 = vadd.f32 %v325_v23, %v301_v22  ;;  %v302_v26 = vld [vmem:[%s1097_s15 + $0x70] sm:$0xff]  ;;  %v326_v27 = vld [vmem:[%s1097_s15 + $0x78] sm:$0xff]  ;;  %v340_v28 = vmax.f32 %v300_v18, %v324_v19  ;;  %v341_v30 = vmax.f32 %v301_v22, %v325_v23  ;;  %v434_v35 = vld [vmem:[%s1208_s1 + $0x28] sm:$0xff]  ;;  %s1165_s15 = scalar_lea.hbm %s1212_s5, %s754_s10  ;;  %p892_p8 = scmp.ne.s32.totalorder %s663_s9, %s891_s14 }
  0x32   : > { %v334_v29 = vadd.f32 %v326_v27, %v302_v26  ;;  %v342_v31 = vmax.f32 %v302_v26, %v326_v27  ;;  %v436_v32 = vld [vmem:[%s1208_s1 + $0x38] sm:$0xff]  ;;  %v435_v34 = vld [vmem:[%s1208_s1 + $0x30] sm:$0xff]  ;;  %v433_v36 = vld [vmem:[%s1208_s1 + $0x20] sm:$0xff]  ;;  %s895_s17 = sshll.u32 %s978_s16, 4  ;;  %s896_s17 = int_to_ptr.vmem [resolvable:$false] %s895_s17 }
  0x33   : > { %372 = vadd.xlane.f32.xlu0 %v328_v8  ;;  %374 = vadd.xlane.f32.xlu1 %v329_v9  ;;  %v432_v37 = vld [vmem:[%s1208_s1 + $0x18] sm:$0xff]  ;;  %v431_v38 = vld [vmem:[%s1208_s1 + $0x10] sm:$0xff]  ;;  %v430_v39 = vld [vmem:[%s1208_s1 + $0x8] sm:$0xff]  ;;  %p893_p12 = pnand %p892_p8, %p1060_p9  ;;  %s897_s21 = scalar_lea.vmem %s896_s17, 32 }
  0x34   : > { %770 = vmatpush3.msra.mxu0 %v436_v32  ;;  %v429_v40 = vld [vmem:[%s1208_s1] sm:$0xff]  ;;  %p898_p1 = scmp.lt.s32.totalorder %s663_s9, %s896_s17  ;;  %p899_p3 = scmp.lt.s32.totalorder %s897_s21, %s891_s14 }
  0x35   : > { %771 = vmatprep.subr.mxu0 %v976_v33  ;;  %v750_v18 = vld [vmem:[%s1211_s4] ss:$0 sm:$0xff]  ;;  %p894_p0 = pneg %p893_p12 }
  0x36   : > { %772 = vmatpush3.msra.mxu0 %v435_v34  ;;  %p900_p5 = por %p899_p3, %p898_p1 }
  0x37   : > { %404 = vmax.xlane.f32.xlu0 %v336_v12  ;;  %376 = vadd.xlane.f32.xlu1 %v330_v13  ;;  %v551_v12 = vld [vmem:[%s1210_s3] sm:$0xf] }
  0x38   : > { %773 = vmatprep.subr.mxu0 %v976_v33  ;;  %789 = vmatpush3.msk.msra.mxu1 %vm563_vm3, %v551_v12  ;;  %v748_v13 = vld [vmem:[%s1209_s2] ss:$0 sm:$0xff]  ;;  %p901_p6 = pnand %p900_p5, %p894_p0 }
  0x39   : > { %774 = vmatpush3.msra.mxu0 %v434_v35 }
  0x3a   : > { %775 = vmatprep.subr.mxu0 %v976_v33 }
  0x3b   : > { %406 = vmax.xlane.f32.xlu0 %v337_v16  ;;  %378 = vadd.xlane.f32.xlu1 %v331_v17 }
  0x3c   : > { %776 = vmatpush3.msra.mxu0 %v433_v36 }
  0x3d   : > { %777 = vmatprep.subr.mxu0 %v976_v33 }
  0x3e   : > { %778 = vmatpush3.msra.mxu0 %v432_v37 }
  0x3f   : > { %408 = vmax.xlane.f32.xlu0 %v338_v20  ;;  %380 = vadd.xlane.f32.xlu1 %v332_v21 }
  0x40   : > { %779 = vmatprep.subr.mxu0 %v976_v33 }
  0x41   : > { %780 = vmatpush3.msra.mxu0 %v431_v38 }
  0x42   : > { %781 = vmatprep.subr.mxu0 %v976_v33 }
  0x43   : > { %410 = vmax.xlane.f32.xlu0 %v339_v24  ;;  %382 = vadd.xlane.f32.xlu1 %v333_v25 }
  0x44   : > { %782 = vmatpush3.msra.mxu0 %v430_v39 }
  0x45   : > { %783 = vmatprep.subr.mxu0 %v976_v33 }
  0x46   : > { %784 = vmatpush3.msra.mxu0 %v429_v40 }
  0x47   : > { %412 = vmax.xlane.f32.xlu0 %v340_v28  ;;  %384 = vadd.xlane.f32.xlu1 %v334_v29 }
  0x4b   : > { %414 = vmax.xlane.f32.xlu0 %v341_v30  ;;  %416 = vmax.xlane.f32.xlu1 %v342_v31 }
  0xb8   : > { %v371_v43 = vpop.xlane.xlu0 %370  ;;  %v403_v44 = vpop.xlane.xlu1 %402 }
  0xb9   : > { %v386_v45 = vmul.f32 0.00390625, %v371_v43 }
  0xbb   : > { %v421_v46 = vsel %vm420_vm1, %v386_v45, %v403_v44 }
  0xbc   : > { %444 = vxpose.xlu0.b32.start [1/8] (short) (narrow) %v421_v46, 8  ;;  %v373_v47 = vpop.xlane.xlu0 %372  ;;  %v375_v48 = vpop.xlane.xlu1 %374 }
  0xbd   : > { %v387_v49 = vmul.f32 0.00390625, %v373_v47  ;;  %v388_v53 = vmul.f32 0.00390625, %v375_v48 }
  0xc0   : > { %v405_v50 = vpop.xlane.xlu0 %404  ;;  %v377_v51 = vpop.xlane.xlu1 %376 }
  0xc1   : > { %v422_v52 = vsel %vm420_vm1, %v387_v49, %v405_v50  ;;  %v389_v57 = vmul.f32 0.00390625, %v377_v51 }
  0xc2   : > { %445 = vxpose.xlu0.b32.cont [2/8] (short) (narrow) %v422_v52, 8 }
  0xc4   : > { %v407_v54 = vpop.xlane.xlu0 %406  ;;  %v379_v55 = vpop.xlane.xlu1 %378 }
  0xc5   : > { %v423_v56 = vsel %vm420_vm1, %v388_v53, %v407_v54  ;;  %v390_v61 = vmul.f32 0.00390625, %v379_v55 }
  0xc6   : > { %446 = vxpose.xlu0.b32.cont [3/8] (short) (narrow) %v423_v56, 8 }
  0xc8   : > { %v409_v58 = vpop.xlane.xlu0 %408  ;;  %v381_v59 = vpop.xlane.xlu1 %380 }
  0xc9   : > { %v424_v60 = vsel %vm420_vm1, %v389_v57, %v409_v58  ;;  %v391_v1 = vmul.f32 0.00390625, %v381_v59 }
  0xca   : > { %447 = vxpose.xlu0.b32.cont [4/8] (short) (narrow) %v424_v60, 8 }
  0xcc   : > { %v411_v62 = vpop.xlane.xlu0 %410  ;;  %v383_v63 = vpop.xlane.xlu1 %382 }
  0xcd   : > { %v425_v0 = vsel %vm420_vm1, %v390_v61, %v411_v62  ;;  %v392_v5 = vmul.f32 0.00390625, %v383_v63 }
  0xce   : > { %448 = vxpose.xlu0.b32.cont [5/8] (short) (narrow) %v425_v0, 8 }
  0xd0   : > { %v413_v2 = vpop.xlane.xlu0 %412  ;;  %v385_v3 = vpop.xlane.xlu1 %384 }
  0xd1   : > { %v426_v4 = vsel %vm420_vm1, %v391_v1, %v413_v2  ;;  %v393_v7 = vmul.f32 0.00390625, %v385_v3 }
  0xd2   : > { %449 = vxpose.xlu0.b32.cont [6/8] (short) (narrow) %v426_v4, 8 }
  0xd4   : > { %v415_v6 = vpop.xlane.xlu0 %414  ;;  %v417_v9 = vpop.xlane.xlu1 %416 }
  0xd5   : > { %v427_v8 = vsel %vm420_vm1, %v392_v5, %v415_v6  ;;  %v428_v10 = vsel %vm420_vm1, %v393_v7, %v417_v9 }
  0xd6   : > { %450 = vxpose.xlu0.b32.cont [7/8] (short) (narrow) %v427_v8, 8 }
  0xda   : > { %451 = vxpose.xlu0.b32.end [8/8] (short) (narrow) %v428_v10, 8 }
 0x13a   : > { %v460_v11 = vpop.trf.xlu0 }
 0x13b   : > { %786 = vmatmul.mubr.msk.f32.vlgmr.msra.gmra.mxu0 %vm476_vm2, %v460_v11 }
 0x1fb   : > { %v546_v14 = vpop.f32.mrf.mxu0 }
 0x1fc   : > { %v547_v15 = vadd.f32 %v748_v13, %v546_v14 }
 0x1fd   : > { %v787_v16 = vpop.f32.mrf.mxu0 }
 0x1fe   : > { %v550_v17 = vmax.f32 %v547_v15, 0.0 }
 0x200   : > { %791 = vmatmul.mubr.msk.f32.vlgmr.msra.gmra.mxu1 %vm559_vm4, %v550_v17 }
 0x2c0   : > { %v633_v19 = vpop.f32.mrf.mxu1 }
 0x2c1   : > { %v634_v20 = vadd.f32 %v750_v18, %v633_v19 }
 0x2c2   : > { %v792_v21 = vpop.f32.mrf.mxu1 }
 0x2c3   : > { %v638_v22 = vrot.slane %v634_v20, 1 }
 0x2c5   : > { %v640_v23 = vadd.f32 %v638_v22, %v634_v20 }
 0x2c7   : > { %v753_v24 = vmul.f32 -1.442695, %v640_v23 }
 0x2c9   : > { %859 = vpow2.f32 %v753_v24 }
 0x2d6   : > { %v860_v25 = vpop.eup %859 }
 0x2d7   : > { %v644_v26 = vadd.f32 1.0, %v860_v25 }
 0x2d9   : > { %861 = vrcp.f32 %v644_v26 }
 0x2e6   : > { %v862_v27 = vpop.eup %861 }
 0x2e7   : > { %648 = vst.msk [vmem:[%s257_s28] sm:$0x1] %vm647_vm5, %v862_v27 }
 0x2e8   : > { %904 = shalt.err (!%p901_p6)
}
 0x2e9   : > { %s905_s24 = scalar_lea.hbm %s1165_s15, 16  ;;  %s909_s27 = scalar_lea.hbm %s1212_s5, 32 }
 0x2ea   : > { %p906_p7 = scmp.ne.s32.totalorder %s1165_s15, %s905_s24  ;;  %p910_p13 = scmp.lt.s32.totalorder %s1165_s15, %s1212_s5 }
 0x2eb   : > { %p911_p2 = scmp.lt.s32.totalorder %s909_s27, %s905_s24 }
 0x2ec   : > { %p907_p10 = pnand %p906_p7, %p1060_p9 }
 0x2ed   : > { %p912_p8 = por %p911_p2, %p910_p13 }
 0x2ee   : > { %p908_p4 = pneg %p907_p10 }
 0x2f0   : > { %p913_p12 = pnand %p912_p8, %p908_p4 }
 0x2f2   : > { %916 = shalt.err (!%p913_p12)
}
 0x2f3   : > { %795 = dma.vmem_to_hbm [thread:$0]  (%p1060_p9), %s663_s9, 16, %s1165_s15, %s650_s30  }
 0x2f4 PF: > { %s674_s28 = sand.u32 1, %s951_s18   ;;  %p1218_p0 = scmp.ge.s32.totalorder %s971_s23, 2 }
 0x2f5   : > { %s675_s12 = scalar_lea.sflag [#allocation6], %s674_s28 }
 0x2f6   : > { %p802_p1 = pnand %p1218_p0, %p1067_p11 }
 0x2f8   : > { %p803_p3 = pneg %p802_p1 }
 0x2fa   : > { %946 = dma.done.wait (%p803_p3), %s675_s12, 16  }
 0x2fb   : > { %948 = vsyncadd (%p803_p3), %s675_s12, 4294967280  ;;  %s21_s23 = sadd.s32 1, %s971_s23   ;;  %s1219_s18 = smov %s955_s19 }
 0x2fc   : > { %p18_p5 = scmp.ge.s32.totalorder %s21_s23, 4   ;;  %s1220_s19 = smov %s959_s20 }
 0x2fd   : > { %s1221_s20 = smov %s1065_s7  ;;  %s1222_s21 = smov %s967_s22 }
 0x2fe   : > { %s1223_s22 = smov %s1225_s26  ;;  %20 = sbr.rel (!%p18_p5) target bundleno = 6 (0x6), region = 93 }
 0x303   :  { %679 = vsyncpa [#allocation5], 1 }
 0x304   :  { %681 = vsyncpa [#allocation5 + $0x1], 1 }
 0x305   :  { %682 = vsyncpa [#allocation6], 1 }
 0x306   :  { %684 = vsyncpa [#allocation6 + $0x1], 1 }

</bundles_post_ra>
